<compile_context>
chip_gen: v5e
topology: v5e:2x2
jax: 0.10.0
libtpu: 0.0.40
codegen_flags: <defaults>
</compile_context>

<pallas_src>
import dataclasses
import functools

import jax
import jax.numpy as jnp
from jax.experimental import pallas as pl
from jax.experimental.pallas import tpu as pltpu


def policy_kernel(x_ref,
                  w1_ref, b1_ref,
                  w2_ref, b2_ref,
                  w3_ref, b3_ref,
                  w4_ref, b4_ref,
                  probs_ref):
    """Fused MLP forward for one batch tile: 3x(Linear+Tanh) -> Linear -> softmax."""
    # In-kernel bf16 cast of the streamed f32 states (hidden under the DMA).
    x = x_ref[...].astype(jnp.bfloat16)                   # [TB, state_dim]

    h = jnp.tanh(jnp.dot(x, w1_ref[...],
                         preferred_element_type=jnp.float32) + b1_ref[...])
    h = jnp.tanh(jnp.dot(h.astype(jnp.bfloat16), w2_ref[...],
                         preferred_element_type=jnp.float32) + b2_ref[...])
    h = jnp.tanh(jnp.dot(h.astype(jnp.bfloat16), w3_ref[...],
                         preferred_element_type=jnp.float32) + b3_ref[...])
    logits = jnp.dot(h.astype(jnp.bfloat16), w4_ref[...],
                     preferred_element_type=jnp.float32) + b4_ref[...]

    # Numerically-stable softmax over the real action dim (no lane padding).
    m = jnp.max(logits, axis=-1, keepdims=True)
    e = jnp.exp(logits - m)
    denom = jnp.sum(e, axis=-1, keepdims=True)
    # approx=False keeps rows summing to 1 within ~1e-6 (kernel is mem-bound,
    # the exact reciprocal costs nothing that matters here).
    probs_ref[...] = (e * pl.reciprocal(denom, approx=False)).astype(probs_ref.dtype)


def _round_up(x, m):
    return ((x + m - 1) // m) * m


@functools.partial(jax.jit, static_argnames=("tb",))
def policy_forward(states, params, *, tb=8192):
    """Run the fused policy net; returns the Categorical `probs` [B, action_dim]."""
    (w1, b1), (w2, b2), (w3, b3), (w4, b4) = params
    B, state_dim = states.shape
    action_dim = w4.shape[1]

    # Batch tile: sublane-aligned, capped at ~half the batch so the "parallel"
    # batch axis always has >=2 steps on large batches (v7x megacore), and at
    # the user-provided cap.
    TB = max(8, min(tb, _round_up(pl.cdiv(B, 2), 8)))
    grid = (pl.cdiv(B, TB),)                 # partial last block is clipped

    # Weights are tiny and call-invariant: one-shot bf16 cast (halves the
    # already-negligible weight DMA and feeds the MXU natively).
    w1b = w1.astype(jnp.bfloat16)
    w2b = w2.astype(jnp.bfloat16)
    w3b = w3.astype(jnp.bfloat16)
    w4b = w4.astype(jnp.bfloat16)

    resident = lambda i: (0, 0)              # weights/biases stay VMEM-resident
    grid_spec = pltpu.PrefetchScalarGridSpec(
        num_scalar_prefetch=0,
        grid=grid,
        in_specs=[
            pl.BlockSpec((TB, state_dim), lambda i: (i, 0)),
            pl.BlockSpec(w1b.shape, resident), pl.BlockSpec(b1.shape, resident),
            pl.BlockSpec(w2b.shape, resident), pl.BlockSpec(b2.shape, resident),
            pl.BlockSpec(w3b.shape, resident), pl.BlockSpec(b3.shape, resident),
            pl.BlockSpec(w4b.shape, resident), pl.BlockSpec(b4.shape, resident),
        ],
        out_specs=pl.BlockSpec((TB, action_dim), lambda i: (i, 0)),
    )

    probs = pl.pallas_call(
        policy_kernel,
        out_shape=jax.ShapeDtypeStruct((B, action_dim), jnp.float32),
        grid_spec=grid_spec,
        compiler_params=pltpu.CompilerParams(
            dimension_semantics=("parallel",),      # batch loop over v7x's 2 TCs
            vmem_limit_bytes=32 * 1024 * 1024,      # ample on v5e/v6e/v7x
        ),
    )(states, w1b, b1, w2b, b2, w3b, b3, w4b, b4)

    return probs


@dataclasses.dataclass
class Args:
    state_dim: int = 16
    units: int = 32
    action_dim: int = 8


def init_params(key, args: Args):
    """Deterministic PyTorch-Linear-style init (uniform +/- 1/sqrt(fan_in))."""
    dims = [args.state_dim, args.units, args.units, args.units, args.action_dim]
    params = []
    for i in range(4):
        key, kw, kb = jax.random.split(key, 3)
        fan_in, fan_out = dims[i], dims[i + 1]
        bound = 1.0 / (fan_in ** 0.5)
        # Stored as [in, out]; biases kept 2D (1, out) for TPU-friendly layout.
        w = jax.random.uniform(kw, (fan_in, fan_out), jnp.float32, -bound, bound)
        b = jax.random.uniform(kb, (1, fan_out), jnp.float32, -bound, bound)
        params.append((w, b))
    return params


def reference_forward_bf16(states, params):
    """Reference matching the kernel's bf16-matmul / f32-accumulate precision."""
    h = states
    for i, (w, b) in enumerate(params):
        h = jnp.dot(h.astype(jnp.bfloat16), w.astype(jnp.bfloat16),
                    preferred_element_type=jnp.float32) + b
        if i < 3:
            h = jnp.tanh(h)
    return jax.nn.softmax(h, axis=-1)


def reference_forward_f32(states, params):
    """Pure-f32 reference (original PyTorch module semantics)."""
    h = states
    for i, (w, b) in enumerate(params):
        h = h @ w + b
        if i < 3:
            h = jnp.tanh(h)
    return jax.nn.softmax(h, axis=-1)


if __name__ == "__main__":
    args = Args(state_dim=16, units=32, action_dim=8)
    key = jax.random.PRNGKey(0)
    key, kx = jax.random.split(key)
    params = init_params(key, args)

    # Small batch (module-typical usage): single grid step, no padding anywhere.
    batch = 8
    states = jax.random.normal(kx, (batch, args.state_dim), jnp.float32)
    probs = jax.block_until_ready(policy_forward(states, params))
    ref_bf16 = reference_forward_bf16(states, params)
    ref_f32 = reference_forward_f32(states, params)
    assert probs.shape == (batch, args.action_dim)
    assert jnp.allclose(probs, ref_bf16, atol=1e-4), "mismatch vs bf16 reference"
    assert jnp.allclose(probs, ref_f32, atol=3e-2), "mismatch vs f32 reference"
    assert jnp.allclose(jnp.sum(probs, axis=-1), 1.0, atol=1e-5), "rows must sum to 1"

    # Larger batch exercising the batch grid + a clipped partial last tile.
    key, kx2 = jax.random.split(key)
    states2 = jax.random.normal(kx2, (200, args.state_dim), jnp.float32)
    probs2 = jax.block_until_ready(policy_forward(states2, params, tb=64))
    ref2 = reference_forward_bf16(states2, params)
    assert probs2.shape == (200, args.action_dim)
    assert jnp.allclose(probs2, ref2, atol=1e-4), "mismatch vs bf16 reference (gridded)"
    assert jnp.allclose(jnp.sum(probs2, axis=-1), 1.0, atol=1e-5), "rows must sum to 1"

    # Default (large-tile) path: TB = ceil(B/2) rounded to 8 -> 2-step grid
    # (one tile per TensorCore on v7x), last tile clipped.
    probs3 = jax.block_until_ready(policy_forward(states2, params))
    assert probs3.shape == (200, args.action_dim)
    assert jnp.allclose(probs3, ref2, atol=1e-4), "mismatch vs bf16 reference (2-step)"

    # TODO(synk): torch.distributions.Categorical (sampling/log_prob/entropy) is
    # wrapper logic, not kernel compute; the kernel returns its `probs` parameter.
    print("KERNEL_OK")
</pallas_src>

<mosaic_0001>
module attributes {stable_mosaic.version = 11 : i64} {
  func.func @policy_kernel(%arg0: i32, %arg1: memref<8x16xf32, #tpu.memory_space<vmem>>, %arg2: memref<16x32xbf16, #tpu.memory_space<vmem>>, %arg3: memref<1x32xf32, #tpu.memory_space<vmem>>, %arg4: memref<32x32xbf16, #tpu.memory_space<vmem>>, %arg5: memref<1x32xf32, #tpu.memory_space<vmem>>, %arg6: memref<32x32xbf16, #tpu.memory_space<vmem>>, %arg7: memref<1x32xf32, #tpu.memory_space<vmem>>, %arg8: memref<32x8xbf16, #tpu.memory_space<vmem>>, %arg9: memref<1x8xf32, #tpu.memory_space<vmem>>, %arg10: memref<8x8xf32, #tpu.memory_space<vmem>>) attributes {dimension_semantics = [#tpu.dimension_semantics<parallel>], iteration_bounds = array<i64: 1>, scalar_prefetch = 0 : i64, scratch_operands = 0 : i64, tpu.core_type = #tpu.core_type<tc>, window_params = [{transform_indices = @transform_0, window_bounds = array<i64: 8, 16>}, {pipeline_mode = #tpu.pipeline_mode<synchronous>, transform_indices = @transform_1, window_bounds = array<i64: 16, 32>}, {pipeline_mode = #tpu.pipeline_mode<synchronous>, transform_indices = @transform_2, window_bounds = array<i64: 1, 32>}, {pipeline_mode = #tpu.pipeline_mode<synchronous>, transform_indices = @transform_3, window_bounds = array<i64: 32, 32>}, {pipeline_mode = #tpu.pipeline_mode<synchronous>, transform_indices = @transform_4, window_bounds = array<i64: 1, 32>}, {pipeline_mode = #tpu.pipeline_mode<synchronous>, transform_indices = @transform_5, window_bounds = array<i64: 32, 32>}, {pipeline_mode = #tpu.pipeline_mode<synchronous>, transform_indices = @transform_6, window_bounds = array<i64: 1, 32>}, {pipeline_mode = #tpu.pipeline_mode<synchronous>, transform_indices = @transform_7, window_bounds = array<i64: 32, 8>}, {pipeline_mode = #tpu.pipeline_mode<synchronous>, transform_indices = @transform_8, window_bounds = array<i64: 1, 8>}, {transform_indices = @transform_9, window_bounds = array<i64: 8, 8>}]} {
    %c0 = arith.constant 0 : index
    %c0_0 = arith.constant 0 : index
    %0 = vector.load %arg1[%c0, %c0_0] : memref<8x16xf32, #tpu.memory_space<vmem>>, vector<8x16xf32>
    %1 = arith.truncf %0 : vector<8x16xf32> to vector<8x16xbf16>
    %c0_1 = arith.constant 0 : index
    %c0_2 = arith.constant 0 : index
    %2 = vector.load %arg2[%c0_1, %c0_2] : memref<16x32xbf16, #tpu.memory_space<vmem>>, vector<16x32xbf16>
    %cst = arith.constant dense<0.000000e+00> : vector<8x32xf32>
    %3 = tpu.matmul %1, %2, %cst {dimension_numbers = #tpu.dot_dimension_numbers<[1], [0], [0], [1], [0, 0, 1, 1], [], []>} : vector<8x16xbf16>, vector<16x32xbf16>, vector<8x32xf32> -> vector<8x32xf32>
    %c0_3 = arith.constant 0 : index
    %c0_4 = arith.constant 0 : index
    %4 = vector.load %arg3[%c0_3, %c0_4] : memref<1x32xf32, #tpu.memory_space<vmem>>, vector<1x32xf32>
    %5 = vector.broadcast %4 : vector<1x32xf32> to vector<8x32xf32>
    %6 = arith.addf %3, %5 : vector<8x32xf32>
    %7 = math.tanh %6 : vector<8x32xf32>
    %8 = arith.truncf %7 : vector<8x32xf32> to vector<8x32xbf16>
    %c0_5 = arith.constant 0 : index
    %c0_6 = arith.constant 0 : index
    %9 = vector.load %arg4[%c0_5, %c0_6] : memref<32x32xbf16, #tpu.memory_space<vmem>>, vector<32x32xbf16>
    %cst_7 = arith.constant dense<0.000000e+00> : vector<8x32xf32>
    %10 = tpu.matmul %8, %9, %cst_7 {dimension_numbers = #tpu.dot_dimension_numbers<[1], [0], [0], [1], [0, 0, 1, 1], [], []>} : vector<8x32xbf16>, vector<32x32xbf16>, vector<8x32xf32> -> vector<8x32xf32>
    %c0_8 = arith.constant 0 : index
    %c0_9 = arith.constant 0 : index
    %11 = vector.load %arg5[%c0_8, %c0_9] : memref<1x32xf32, #tpu.memory_space<vmem>>, vector<1x32xf32>
    %12 = vector.broadcast %11 : vector<1x32xf32> to vector<8x32xf32>
    %13 = arith.addf %10, %12 : vector<8x32xf32>
    %14 = math.tanh %13 : vector<8x32xf32>
    %15 = arith.truncf %14 : vector<8x32xf32> to vector<8x32xbf16>
    %c0_10 = arith.constant 0 : index
    %c0_11 = arith.constant 0 : index
    %16 = vector.load %arg6[%c0_10, %c0_11] : memref<32x32xbf16, #tpu.memory_space<vmem>>, vector<32x32xbf16>
    %cst_12 = arith.constant dense<0.000000e+00> : vector<8x32xf32>
    %17 = tpu.matmul %15, %16, %cst_12 {dimension_numbers = #tpu.dot_dimension_numbers<[1], [0], [0], [1], [0, 0, 1, 1], [], []>} : vector<8x32xbf16>, vector<32x32xbf16>, vector<8x32xf32> -> vector<8x32xf32>
    %c0_13 = arith.constant 0 : index
    %c0_14 = arith.constant 0 : index
    %18 = vector.load %arg7[%c0_13, %c0_14] : memref<1x32xf32, #tpu.memory_space<vmem>>, vector<1x32xf32>
    %19 = vector.broadcast %18 : vector<1x32xf32> to vector<8x32xf32>
    %20 = arith.addf %17, %19 : vector<8x32xf32>
    %21 = math.tanh %20 : vector<8x32xf32>
    %22 = arith.truncf %21 : vector<8x32xf32> to vector<8x32xbf16>
    %c0_15 = arith.constant 0 : index
    %c0_16 = arith.constant 0 : index
    %23 = vector.load %arg8[%c0_15, %c0_16] : memref<32x8xbf16, #tpu.memory_space<vmem>>, vector<32x8xbf16>
    %cst_17 = arith.constant dense<0.000000e+00> : vector<8x8xf32>
    %24 = tpu.matmul %22, %23, %cst_17 {dimension_numbers = #tpu.dot_dimension_numbers<[1], [0], [0], [1], [0, 0, 1, 1], [], []>} : vector<8x32xbf16>, vector<32x8xbf16>, vector<8x8xf32> -> vector<8x8xf32>
    %c0_18 = arith.constant 0 : index
    %c0_19 = arith.constant 0 : index
    %25 = vector.load %arg9[%c0_18, %c0_19] : memref<1x8xf32, #tpu.memory_space<vmem>>, vector<1x8xf32>
    %26 = vector.broadcast %25 : vector<1x8xf32> to vector<8x8xf32>
    %27 = arith.addf %24, %26 : vector<8x8xf32>
    %cst_20 = arith.constant dense<0xFF800000> : vector<8xf32>
    %28 = vector.multi_reduction <maximumf>, %27, %cst_20 [1] : vector<8x8xf32> to vector<8xf32>
    %29 = vector.shape_cast %28 : vector<8xf32> to vector<8x1xf32>
    %30 = vector.broadcast %29 : vector<8x1xf32> to vector<8x8xf32>
    %31 = arith.subf %27, %30 : vector<8x8xf32>
    %32 = math.exp %31 : vector<8x8xf32>
    %cst_21 = arith.constant dense<0.000000e+00> : vector<8xf32>
    %33 = vector.multi_reduction <add>, %32, %cst_21 [1] : vector<8x8xf32> to vector<8xf32>
    %34 = vector.shape_cast %33 : vector<8xf32> to vector<8x1xf32>
    %35 = tpu.reciprocal %34 : vector<8x1xf32> -> vector<8x1xf32>
    %36 = vector.broadcast %35 : vector<8x1xf32> to vector<8x8xf32>
    %37 = arith.mulf %32, %36 : vector<8x8xf32>
    %c0_22 = arith.constant 0 : index
    %c0_23 = arith.constant 0 : index
    %38 = vector.load %arg10[%c0_22, %c0_23] : memref<8x8xf32, #tpu.memory_space<vmem>>, vector<8x8xf32>
    tpu.vector_store %arg10[%c0_22, %c0_23], %37 {strides = array<i32>} : memref<8x8xf32, #tpu.memory_space<vmem>>, vector<8x8xf32>,
    return
  }
  func.func @transform_0(%arg0: i32) -> (i32, i32) {
    %c0_i32 = arith.constant 0 : i32
    %c0_i32_0 = arith.constant 0 : i32
    return %arg0, %c0_i32 : i32, i32
  }
  func.func @transform_1(%arg0: i32) -> (i32, i32) {
    %c0_i32 = arith.constant 0 : i32
    %c0_i32_0 = arith.constant 0 : i32
    %c0_i32_1 = arith.constant 0 : i32
    return %c0_i32, %c0_i32_0 : i32, i32
  }
  func.func @transform_2(%arg0: i32) -> (i32, i32) {
    %c0_i32 = arith.constant 0 : i32
    %c0_i32_0 = arith.constant 0 : i32
    %c0_i32_1 = arith.constant 0 : i32
    return %c0_i32, %c0_i32_0 : i32, i32
  }
  func.func @transform_3(%arg0: i32) -> (i32, i32) {
    %c0_i32 = arith.constant 0 : i32
    %c0_i32_0 = arith.constant 0 : i32
    %c0_i32_1 = arith.constant 0 : i32
    return %c0_i32, %c0_i32_0 : i32, i32
  }
  func.func @transform_4(%arg0: i32) -> (i32, i32) {
    %c0_i32 = arith.constant 0 : i32
    %c0_i32_0 = arith.constant 0 : i32
    %c0_i32_1 = arith.constant 0 : i32
    return %c0_i32, %c0_i32_0 : i32, i32
  }
  func.func @transform_5(%arg0: i32) -> (i32, i32) {
    %c0_i32 = arith.constant 0 : i32
    %c0_i32_0 = arith.constant 0 : i32
    %c0_i32_1 = arith.constant 0 : i32
    return %c0_i32, %c0_i32_0 : i32, i32
  }
  func.func @transform_6(%arg0: i32) -> (i32, i32) {
    %c0_i32 = arith.constant 0 : i32
    %c0_i32_0 = arith.constant 0 : i32
    %c0_i32_1 = arith.constant 0 : i32
    return %c0_i32, %c0_i32_0 : i32, i32
  }
  func.func @transform_7(%arg0: i32) -> (i32, i32) {
    %c0_i32 = arith.constant 0 : i32
    %c0_i32_0 = arith.constant 0 : i32
    %c0_i32_1 = arith.constant 0 : i32
    return %c0_i32, %c0_i32_0 : i32, i32
  }
  func.func @transform_8(%arg0: i32) -> (i32, i32) {
    %c0_i32 = arith.constant 0 : i32
    %c0_i32_0 = arith.constant 0 : i32
    %c0_i32_1 = arith.constant 0 : i32
    return %c0_i32, %c0_i32_0 : i32, i32
  }
  func.func @transform_9(%arg0: i32) -> (i32, i32) {
    %c0_i32 = arith.constant 0 : i32
    %c0_i32_0 = arith.constant 0 : i32
    return %arg0, %c0_i32 : i32, i32
  }
}

</mosaic_0001>

<bundles_post_ra>
// kernel: policy_forward.1
= control target key start
LH: loop header
LB: loop body
LE: loop exit
PB: predicated region body
PF: predicated region fallthrough
CT: control target
= control target key end

     0   :  { %vm48_vm0 = vcmask 130048   ;;  %s398_s0 = inlined_call_operand.vmem [shape: f32[8,16], index: 0, kind: input, shape index: {}]   ;;  %s399_s1 = inlined_call_operand.vmem [shape: bf16[16,32], index: 1, kind: input, shape index: {}]   ;;  %s400_s2 = inlined_call_operand.vmem [shape: f32[1,32], index: 2, kind: input, shape index: {}]   ;;  %s401_s3 = inlined_call_operand.vmem [shape: bf16[32,32], index: 3, kind: input, shape index: {}]   ;;  %s402_s4 = inlined_call_operand.vmem [shape: f32[1,32], index: 4, kind: input, shape index: {}]   ;;  %s403_s5 = inlined_call_operand.vmem [shape: bf16[32,32], index: 5, kind: input, shape index: {}]   ;;  %s404_s6 = inlined_call_operand.vmem [shape: f32[1,32], index: 6, kind: input, shape index: {}]   ;;  %s405_s7 = inlined_call_operand.vmem [shape: bf16[32,8], index: 7, kind: input, shape index: {}]   ;;  %s406_s8 = inlined_call_operand.vmem [shape: f32[1,8], index: 8, kind: input, shape index: {}]   ;;  %s407_s9 = inlined_call_operand.hbm [shape: f32[8,8], index: 9, kind: output, shape index: {}]  }
   0x1   :  { %v254_v0 = vld [vmem:[%s399_s1] sm:$0xff] }
   0x2   :  { %v34_v1 = vld [vmem:[%s398_s0] sm:$0xff]  ;;  %59 = vmatpush.bf16.msra.mxu0 %v254_v0 }
   0x3   :  { %v35_v2 = vpack.c.bf16 %v34_v1, %v34_v1 }
   0x4   :  { %14 = vsyncpa [#allocation3], 0  ;;  %v256_v3 = vld [vmem:[%s401_s3 + $0x8] sm:$0xff]  ;;  %v255_v4 = vld [vmem:[%s401_s3] sm:$0xff]  ;;  %vm87_vm1 = vcmask 261120   ;;  %vm180_vm2 = vcmask 64512  }
   0x5   :  { %226 = vmatmul.msk.bf16.vlgmr.msra.gmra.mxu0 %vm48_vm0, %v35_v2  ;;  %97 = vmatpush.bf16.msra.mxu1 %v256_v3  ;;  %v262_v5 = vld [vmem:[%s400_s2] ss:$0 sm:$0xff]  ;;  %v258_v11 = vld [vmem:[%s403_s5 + $0x8] sm:$0xff]  ;;  %s213_s28 = sshll.u32 %s407_s9, 4  ;;  %s214_s28 = int_to_ptr.hbm [resolvable:$true] %s213_s28 }
   0x6   :  { %135 = vmatpush.bf16.msra.mxu2 %v258_v11  ;;  %v257_v12 = vld [vmem:[%s403_s5] sm:$0xff]  ;;  %v260_v19 = vld [vmem:[%s405_s7 + $0x8] sm:$0xff] }
   0x7   :  { %v263_v13 = vld [vmem:[%s402_s4] ss:$0 sm:$0xff]  ;;  %173 = vmatpush.bf16.msra.mxu3 %v260_v19 }
   0x8   :  { %v259_v20 = vld [vmem:[%s405_s7] sm:$0xff] }
   0x9   :  { %98 = vmatpush.bf16.msra.mxu1 %v255_v4  ;;  %v264_v21 = vld [vmem:[%s404_s6] ss:$0 sm:$0xff]  ;;  %s302_s6 = smov [#allocation2]  }
   0xa   :  { %136 = vmatpush.bf16.msra.mxu2 %v257_v12  ;;  %v265_v27 = vld [vmem:[%s406_s8] ss:$0 sm:$0xff]  ;;  %s211_s7 = sshll.u32 %s302_s6, 4  ;;  %s212_s7 = int_to_ptr.vmem [resolvable:$true] %s211_s7 }
   0xb   :  { %174 = vmatpush.bf16.msra.mxu3 %v259_v20 }
  0x82   :  { %v61_v6 = vpop.f32.mrf.mxu0 }
  0x83   :  { %v62_v7 = vadd.f32 %v262_v5, %v61_v6 }
  0x85   :  { %266 = vtanh.f32 %v62_v7 }
  0x8a   :  { %v63_v8 = vpop.f32.mrf.mxu0 }
  0x8b   :  { %v267_v9 = vpop.eup %266 }
  0x8c   :  { %v66_v10 = vpack.c.bf16 %v267_v9, %v267_v9 }
  0x8e   :  { %235 = vmatmul.msk.bf16.vlgmr.msra.gmra.mxu1 %vm87_vm1, %v66_v10 }
 0x10b   :  { %v100_v14 = vpop.f32.mrf.mxu1 }
 0x10c   :  { %v101_v15 = vadd.f32 %v263_v13, %v100_v14 }
 0x10e   :  { %268 = vtanh.f32 %v101_v15 }
 0x113   :  { %v102_v16 = vpop.f32.mrf.mxu1 }
 0x114   :  { %v269_v17 = vpop.eup %268 }
 0x115   :  { %v105_v18 = vpack.c.bf16 %v269_v17, %v269_v17 }
 0x117   :  { %244 = vmatmul.msk.bf16.vlgmr.msra.gmra.mxu2 %vm87_vm1, %v105_v18 }
 0x19a   :  { %v138_v22 = vpop.f32.mrf.mxu2 }
 0x19b   :  { %v139_v23 = vadd.f32 %v264_v21, %v138_v22 }
 0x19d   :  { %270 = vtanh.f32 %v139_v23 }
 0x1a2   :  { %v140_v24 = vpop.f32.mrf.mxu2 }
 0x1a3   :  { %v271_v25 = vpop.eup %270 }
 0x1a4   :  { %v143_v26 = vpack.c.bf16 %v271_v25, %v271_v25 }
 0x1a6   :  { %253 = vmatmul.msk.bf16.vlgmr.msra.gmra.mxu3 %vm87_vm1, %v143_v26 }
 0x229   :  { %v176_v28 = vpop.f32.mrf.mxu3 }
 0x22a   :  { %v177_v29 = vadd.f32 %v265_v27, %v176_v28 }
 0x22c   :  { %v181_v30 = vsel %vm180_vm2, %v177_v29, -inf }
 0x22d   :  { %182 = vmax.xlane.f32.xlu0 %v181_v30 }
 0x231   :  { %v178_v31 = vpop.f32.mrf.mxu3 }
 0x2a0   :  { %v183_v32 = vpop.xlane.xlu0 %182 }
 0x2a1   :  { %v184_v33 = vsub.f32 %v177_v29, %v183_v32 }
 0x2a3   :  { %v185_v34 = vmul.f32 1.442695, %v184_v33 }
 0x2a5   :  { %272 = vpow2.f32 %v185_v34 }
 0x2ab   :  { %v273_v35 = vpop.eup %272 }
 0x2ac   :  { %v187_v36 = vsel %vm180_vm2, %v273_v35, 0.0 }
 0x2ad   :  { %188 = vadd.xlane.f32.xlu0 %v187_v36 }
 0x320   :  { %v189_v37 = vpop.xlane.xlu0 %188 }
 0x321   :  { %274 = vrcp.f32 %v189_v37  ;;  %v201_v41 = vand.u32 2147483648, %v189_v37  ;;  %v199_v43 = vand.u32 2147483647, %v189_v37  ;;  %vm195_vm4 = vweird.f32 %v189_v37 }
 0x323   :  { %v202_v45 = vor.u32 1.1754944e-38, %v201_v41  ;;  %vm200_vm6 = vcmp.eq.f32.partialorder %v199_v43, 8.507059e+37 }
 0x327   :  { %v275_v38 = vpop.eup %274 }
 0x328   :  { %v191_v39 = vmul.f32 %v275_v38, %v189_v37  ;;  %vm196_vm3 = vweird.f32 %v275_v38 }
 0x329   :  { %vm197_vm5 = vmor %vm195_vm4, %vm196_vm3 }
 0x32a   :  { %v192_v40 = vsub.f32 1.0, %v191_v39 }
 0x32c   :  { %v193_v42 = vmul.f32 %v275_v38, %v192_v40 }
 0x32e   :  { %v194_v44 = vadd.f32 %v275_v38, %v193_v42 }
 0x330   :  { %v198_v46 = vsel %vm197_vm5, %v275_v38, %v194_v44 }
 0x331   :  { %v203_v47 = vsel %vm200_vm6, %v202_v45, %v198_v46 }
 0x332   :  { %v204_v48 = vmul.f32 %v273_v35, %v203_v47 }
 0x334   :  { %205 = vst.msk [vmem:[#allocation2] sm:$0xff] %vm180_vm2, %v204_v48 }
 0x335   :  { %216 = dma.vmem_to_hbm [thread:$0]  %s212_s7, 128, %s214_s28, [#allocation3]  }
 0x336   :  { %300 = dma.done.wait [#allocation3], 128  }
 0x337   :  { %301 = vsyncadd [#allocation3], 4294967168 }
 0x338   :  { %221 = vsyncpa [#allocation3], 1 }

</bundles_post_ra>
